<compile_context>
chip_gen: v5e
topology: v5e:2x2
jax: 0.10.0
libtpu: 0.0.40
codegen_flags: <defaults>
</compile_context>

<pallas_src>
import functools
from collections import OrderedDict

import jax
import jax.numpy as jnp
from jax.experimental import pallas as pl
from jax.experimental.pallas import tpu as pltpu


def _round_up(x, m):
    return ((x + m - 1) // m) * m


# ----------------------------- Pallas kernel ------------------------------

def _hyper_fused_kernel(tile_param_ref, tile_col_ref, tile_first_ref,
                        z_ref, w0_ref, b0_ref, *rest, num_hidden):
    """One grid step = one lane-dense (B_pad, tn) tile of some parameter's
    final Linear layer.  The shared ReLU trunk of that parameter's FCBlock is
    (re)computed only on the parameter's first tile and cached in VMEM."""
    del tile_param_ref, tile_col_ref  # consumed by the index_maps only
    if num_hidden > 0:
        wh_ref, bh_ref, wl_ref, bl_ref, o_ref, h_ref = rest
    else:
        wl_ref, bl_ref, o_ref, h_ref = rest
        wh_ref = bh_ref = None

    t = pl.program_id(0)

    @pl.when(tile_first_ref[t] == 1)
    def _():
        # First layer: (B, in) @ (in, H) + b, ReLU.  bf16 operands, f32 acc.
        h = jnp.dot(z_ref[...], w0_ref[...], preferred_element_type=jnp.float32)
        h = jnp.maximum(h + b0_ref[...], 0.0)
        # Hidden layers (small static unroll).
        for li in range(num_hidden):
            h = jnp.dot(h.astype(jnp.bfloat16), wh_ref[li],
                        preferred_element_type=jnp.float32)
            h = jnp.maximum(h + bh_ref[li], 0.0)
        h_ref[...] = h.astype(jnp.bfloat16)

    # Final (outermost_linear=True) layer, one lane-dense tile:
    # (B, H) @ (H, tn) + b  -> f32 output tile.
    out = jnp.dot(h_ref[...], wl_ref[...], preferred_element_type=jnp.float32)
    o_ref[...] = (out + bl_ref[...]).astype(o_ref.dtype)


# --------------------------- Parameter building ---------------------------

def _kaiming_normal(key, out_f, in_f, scale=1.0):
    # kaiming_normal_(a=0, nonlinearity='relu', mode='fan_in')
    std = (2.0 / in_f) ** 0.5
    return scale * std * jax.random.normal(key, (out_f, in_f), jnp.float32)


def build_hypernetwork_params(key, hypo_param_shapes, hyper_in_features,
                              hyper_hidden_layers, hyper_hidden_features,
                              last_tile=1024):
    """Build one FCBlock per hypo parameter, stacked / concatenated for the
    fused kernel.

    Per-parameter FCBlock (outermost_linear=True, nonlinearity='relu'):
      Linear(hyper_in, H) + ReLU
      hyper_hidden_layers * [Linear(H, H) + ReLU]
      Linear(H, prod(param_shape))     # hyper_weight_init / hyper_bias_init

    All weights are pre-transposed to (in, out) and cast to bf16; the last
    layers are padded per-parameter to a multiple of the tile width `tn` and
    concatenated along out-features.
    """
    H = hyper_hidden_features
    F_in = hyper_in_features
    L = hyper_hidden_layers

    names = list(hypo_param_shapes.keys())
    out_totals = OrderedDict()
    for name, pshape in hypo_param_shapes.items():
        tot = 1
        for d in pshape:
            tot *= d
        out_totals[name] = tot
    max_out = max(out_totals.values())

    # Lane-dense tile width for the final layer.  Bigger tiles amortize the
    # ~0.35us per-grid-step overhead; clamp so the double-buffered streamed
    # bf16 weight blocks (Wh stack + W_last tile) stay within a conservative
    # VMEM budget (v7x only has 64 MiB of VMEM).
    tn = _round_up(min(last_tile, _round_up(max_out, 128)), 128)
    budget = 40 << 20
    while tn > 128 and 2 * 2 * (max(L, 0) * H * H + H * tn) > budget:
        tn = max(128, _round_up(tn // 2, 128))

    # Per-parameter padded widths + flat tile tables (scalar prefetch).
    pad_widths, col_offsets = OrderedDict(), OrderedDict()
    tile_param, tile_col, tile_first = [], [], []
    col = 0
    for i, name in enumerate(names):
        pw = _round_up(out_totals[name], tn)
        pad_widths[name] = pw
        col_offsets[name] = col
        for j in range(pw // tn):
            tile_param.append(i)
            tile_col.append(col // tn + j)
            tile_first.append(1 if j == 0 else 0)
        col += pw
    total_pad = col

    w0_list, b0_list, wh_list, bh_list = [], [], [], []
    wl_cols, bl_cols = [], []
    for name, pshape in hypo_param_shapes.items():
        out_total = out_totals[name]
        pw = pad_widths[name]

        # Trunk first layer (init_weights_normal: kaiming fan_in / relu).
        key, kw, kb = jax.random.split(key, 3)
        w0_list.append(_kaiming_normal(kw, H, F_in).T)              # (F_in, H)
        bnd = 1.0 / (F_in ** 0.5)
        b0_list.append(jax.random.uniform(kb, (1, H), jnp.float32, -bnd, bnd))

        # Trunk hidden layers.
        if L > 0:
            whs, bhs = [], []
            bnd = 1.0 / (H ** 0.5)
            for _ in range(L):
                key, kw, kb = jax.random.split(key, 3)
                whs.append(_kaiming_normal(kw, H, H).T)             # (H, H)
                bhs.append(jax.random.uniform(kb, (1, H), jnp.float32, -bnd, bnd))
            wh_list.append(jnp.stack(whs))                          # (L, H, H)
            bh_list.append(jnp.stack(bhs))                          # (L, 1, H)

        # Last layer: hyper_weight_init / hyper_bias_init (kaiming/100).
        key, kw, kb = jax.random.split(key, 3)
        wl_p = _kaiming_normal(kw, out_total, H, scale=1.0 / 100.0).T   # (H, out)
        if 'weight' in name:
            bound = 1.0 / float(pshape[-1])     # in_features of the hypo layer
        else:  # 'bias'
            bound = 1.0 / float(H)              # fan_in of this last linear
        bl_p = jax.random.uniform(kb, (out_total,), jnp.float32, -bound, bound)
        wl_cols.append(jnp.pad(wl_p, ((0, 0), (0, pw - out_total))))
        bl_cols.append(jnp.pad(bl_p, (0, pw - out_total)))

    hyper = {
        "w0": jnp.stack(w0_list).astype(jnp.bfloat16),              # (P, F_in, H)
        "b0": jnp.stack(b0_list),                                   # (P, 1, H) f32
        "wl": jnp.concatenate(wl_cols, axis=1).astype(jnp.bfloat16),  # (H, TOTAL)
        "bl": jnp.concatenate(bl_cols).reshape(1, total_pad),       # (1, TOTAL) f32
        "tile_param": jnp.asarray(tile_param, jnp.int32),
        "tile_col": jnp.asarray(tile_col, jnp.int32),
        "tile_first": jnp.asarray(tile_first, jnp.int32),
        "names": names,
        "param_shapes": OrderedDict(hypo_param_shapes),
        "out_totals": out_totals,
        "col_offsets": col_offsets,
        "total_pad": total_pad,
        "last_tile": tn,
        "num_hidden": L,
    }
    if L > 0:
        hyper["wh"] = jnp.stack(wh_list).astype(jnp.bfloat16)       # (P, L, H, H)
        hyper["bh"] = jnp.stack(bh_list)                            # (P, L, 1, H) f32
    return hyper


# ------------------------------- Forward ----------------------------------

def hypernetwork_forward(z, hyper):
    """Mirrors HyperNetwork.forward: one fused Pallas call over all FCBlocks'
    real output tiles, then per-parameter slice + reshape to (-1,) + shape."""
    w0, b0, wl, bl = hyper["w0"], hyper["b0"], hyper["wl"], hyper["bl"]
    tile_param = hyper["tile_param"]
    tile_col = hyper["tile_col"]
    tile_first = hyper["tile_first"]
    P, F_in, H = w0.shape
    total_pad = hyper["total_pad"]
    tn = hyper["last_tile"]
    L = hyper["num_hidden"]
    T = int(tile_param.shape[0])

    # Pad batch to a sublane-aligned width (unmasked stores / MXU rows).
    B = z.shape[0]
    B_pad = _round_up(max(B, 1), 8)
    z_p = z if B_pad == B else jnp.pad(z, ((0, B_pad - B), (0, 0)))
    z_p = z_p.astype(jnp.bfloat16)

    in_specs = [
        pl.BlockSpec((B_pad, F_in), lambda t, tp, tc, tf: (0, 0)),           # z (shared)
        pl.BlockSpec((None, F_in, H), lambda t, tp, tc, tf: (tp[t], 0, 0)),  # W0
        pl.BlockSpec((None, 1, H), lambda t, tp, tc, tf: (tp[t], 0, 0)),     # b0
    ]
    args = [z_p, w0, b0]
    if L > 0:
        in_specs += [
            pl.BlockSpec((None, L, H, H), lambda t, tp, tc, tf: (tp[t], 0, 0, 0)),  # Wh
            pl.BlockSpec((None, L, 1, H), lambda t, tp, tc, tf: (tp[t], 0, 0, 0)),  # bh
        ]
        args += [hyper["wh"], hyper["bh"]]
    in_specs += [
        pl.BlockSpec((H, tn), lambda t, tp, tc, tf: (0, tc[t])),             # W_last tile
        pl.BlockSpec((1, tn), lambda t, tp, tc, tf: (0, tc[t])),             # b_last tile
    ]
    args += [wl, bl]

    # Explicit VMEM budget: double-buffered blocks + bf16 trunk scratch.
    blk_bytes = (z_p.size * 2 + F_in * H * 2 + H * 4
                 + (L * H * H * 2 + L * H * 4 if L > 0 else 0)
                 + H * tn * 2 + tn * 4 + B_pad * tn * 4)
    vmem_limit = int(min(2 * blk_bytes + B_pad * H * 2 + (2 << 20), 100 << 20))
    vmem_limit = max(vmem_limit, 16 << 20)

    flops = int(2 * B_pad * (P * (F_in * H + L * H * H) + H * total_pad))
    bytes_accessed = int(z_p.size * 2 + w0.size * 2 + b0.size * 4
                         + (hyper["wh"].size * 2 + hyper["bh"].size * 4 if L > 0 else 0)
                         + wl.size * 2 + bl.size * 4 + B_pad * total_pad * 4)

    out = pl.pallas_call(
        functools.partial(_hyper_fused_kernel, num_hidden=L),
        out_shape=jax.ShapeDtypeStruct((B_pad, total_pad), jnp.float32),
        grid_spec=pltpu.PrefetchScalarGridSpec(
            num_scalar_prefetch=3,
            grid=(T,),
            in_specs=in_specs,
            out_specs=pl.BlockSpec((B_pad, tn), lambda t, tp, tc, tf: (0, tc[t])),
            scratch_shapes=[pltpu.VMEM((B_pad, H), jnp.bfloat16)],   # cached trunk
        ),
        compiler_params=pltpu.CompilerParams(
            # Keep the flat tile axis sequential: tiles after a parameter's
            # first tile reuse the trunk cached in the VMEM scratch.
            dimension_semantics=("arbitrary",),
            vmem_limit_bytes=vmem_limit),
        cost_estimate=pl.CostEstimate(flops=flops, transcendentals=0,
                                      bytes_accessed=bytes_accessed),
    )(tile_param, tile_col, tile_first, *args)

    params = OrderedDict()
    for name in hyper["names"]:
        pshape = tuple(hyper["param_shapes"][name])
        n_out = hyper["out_totals"][name]
        off = hyper["col_offsets"][name]
        params[name] = out[:B, off:off + n_out].reshape((-1,) + pshape)
    return params


# --------------------------------- Main ------------------------------------

if __name__ == "__main__":
    # Synthetic hypo-module (a small 2-layer MLP) whose parameters are predicted.
    hypo_param_shapes = OrderedDict([
        ("net.0.0.weight", (16, 2)),
        ("net.0.0.bias",   (16,)),
        ("net.1.0.weight", (3, 16)),
        ("net.1.0.bias",   (3,)),
    ])

    hyper_in_features = 8
    hyper_hidden_layers = 1
    hyper_hidden_features = 32
    batch = 2

    key = jax.random.PRNGKey(0)
    key, kp, kz = jax.random.split(key, 3)

    hyper = build_hypernetwork_params(
        kp, hypo_param_shapes, hyper_in_features,
        hyper_hidden_layers, hyper_hidden_features)

    z = jax.random.normal(kz, (batch, hyper_in_features), jnp.float32)

    out = hypernetwork_forward(z, hyper)

    # Block on all outputs and sanity-check shapes / dtype / finiteness.
    for name, pshape in hypo_param_shapes.items():
        arr = jax.block_until_ready(out[name])
        assert arr.shape == (batch,) + tuple(pshape), (name, arr.shape)
        assert arr.dtype == jnp.float32
        assert bool(jnp.all(jnp.isfinite(arr)))

    print("KERNEL_OK")
</pallas_src>

<mosaic_0001>
module attributes {stable_mosaic.version = 11 : i64} {
  func.func @_hyper_fused_kernel(%arg0: i32, %arg1: memref<4xi32, #tpu.memory_space<smem>>, %arg2: memref<4xi32, #tpu.memory_space<smem>>, %arg3: memref<4xi32, #tpu.memory_space<smem>>, %arg4: memref<8x8xbf16, #tpu.memory_space<vmem>>, %arg5: memref<1x8x32xbf16, #tpu.memory_space<vmem>>, %arg6: memref<1x1x32xf32, #tpu.memory_space<vmem>>, %arg7: memref<1x1x32x32xbf16, #tpu.memory_space<vmem>>, %arg8: memref<1x1x1x32xf32, #tpu.memory_space<vmem>>, %arg9: memref<32x128xbf16, #tpu.memory_space<vmem>>, %arg10: memref<1x128xf32, #tpu.memory_space<vmem>>, %arg11: memref<8x128xf32, #tpu.memory_space<vmem>>, %arg12: memref<8x32xbf16, #tpu.memory_space<vmem>>) attributes {dimension_semantics = [#tpu.dimension_semantics<arbitrary>], iteration_bounds = array<i64: 4>, scalar_prefetch = 3 : i64, scratch_operands = 1 : i64, tpu.core_type = #tpu.core_type<tc>, window_params = [{pipeline_mode = #tpu.pipeline_mode<synchronous>, transform_indices = @transform_0, window_bounds = array<i64: 8, 8>}, {transform_indices = @transform_1, window_bounds = array<i64: 1, 8, 32>}, {transform_indices = @transform_2, window_bounds = array<i64: 1, 1, 32>}, {transform_indices = @transform_3, window_bounds = array<i64: 1, 1, 32, 32>}, {transform_indices = @transform_4, window_bounds = array<i64: 1, 1, 1, 32>}, {transform_indices = @transform_5, window_bounds = array<i64: 32, 128>}, {transform_indices = @transform_6, window_bounds = array<i64: 1, 128>}, {transform_indices = @transform_7, window_bounds = array<i64: 8, 128>}]} {
    %0 = arith.index_cast %arg0 : i32 to index
    %1 = memref.load %arg3[%0] : memref<4xi32, #tpu.memory_space<smem>>
    %c1_i32 = arith.constant 1 : i32
    %2 = arith.cmpi eq, %1, %c1_i32 : i32
    %3 = arith.extui %2 : i1 to i32
    %c0_i32 = arith.constant 0 : i32
    %4 = arith.cmpi ne, %3, %c0_i32 : i32
    scf.if %4 {
      %c0_7 = arith.constant 0 : index
      %c0_8 = arith.constant 0 : index
      %12 = vector.load %arg4[%c0_7, %c0_8] : memref<8x8xbf16, #tpu.memory_space<vmem>>, vector<8x8xbf16>
      %c0_9 = arith.constant 0 : index
      %c0_10 = arith.constant 0 : index
      %c0_11 = arith.constant 0 : index
      %13 = vector.load %arg5[%c0_9, %c0_10, %c0_11] : memref<1x8x32xbf16, #tpu.memory_space<vmem>>, vector<1x8x32xbf16>
      %14 = vector.shape_cast %13 : vector<1x8x32xbf16> to vector<8x32xbf16>
      %cst_12 = arith.constant dense<0.000000e+00> : vector<8x32xf32>
      %15 = tpu.matmul %12, %14, %cst_12 {dimension_numbers = #tpu.dot_dimension_numbers<[1], [0], [0], [1], [0, 0, 1, 1], [], []>} : vector<8x8xbf16>, vector<8x32xbf16>, vector<8x32xf32> -> vector<8x32xf32>
      %c0_13 = arith.constant 0 : index
      %c0_14 = arith.constant 0 : index
      %c0_15 = arith.constant 0 : index
      %16 = vector.load %arg6[%c0_13, %c0_14, %c0_15] : memref<1x1x32xf32, #tpu.memory_space<vmem>>, vector<1x1x32xf32>
      %17 = vector.shape_cast %16 : vector<1x1x32xf32> to vector<1x32xf32>
      %18 = vector.broadcast %17 : vector<1x32xf32> to vector<8x32xf32>
      %19 = arith.addf %15, %18 : vector<8x32xf32>
      %cst_16 = arith.constant 0.000000e+00 : f32
      %20 = vector.broadcast %cst_16 : f32 to vector<8x32xf32>
      %21 = arith.maximumf %19, %20 : vector<8x32xf32>
      %22 = arith.truncf %21 : vector<8x32xf32> to vector<8x32xbf16>
      %c0_17 = arith.constant 0 : index
      %c0_18 = arith.constant 0 : index
      %c0_19 = arith.constant 0 : index
      %c0_20 = arith.constant 0 : index
      %23 = vector.load %arg7[%c0_17, %c0_18, %c0_19, %c0_20] : memref<1x1x32x32xbf16, #tpu.memory_space<vmem>>, vector<1x1x32x32xbf16>
      %24 = vector.shape_cast %23 : vector<1x1x32x32xbf16> to vector<32x32xbf16>
      %cst_21 = arith.constant dense<0.000000e+00> : vector<8x32xf32>
      %25 = tpu.matmul %22, %24, %cst_21 {dimension_numbers = #tpu.dot_dimension_numbers<[1], [0], [0], [1], [0, 0, 1, 1], [], []>} : vector<8x32xbf16>, vector<32x32xbf16>, vector<8x32xf32> -> vector<8x32xf32>
      %c0_22 = arith.constant 0 : index
      %c0_23 = arith.constant 0 : index
      %c0_24 = arith.constant 0 : index
      %c0_25 = arith.constant 0 : index
      %26 = vector.load %arg8[%c0_22, %c0_23, %c0_24, %c0_25] : memref<1x1x1x32xf32, #tpu.memory_space<vmem>>, vector<1x1x1x32xf32>
      %27 = vector.shape_cast %26 : vector<1x1x1x32xf32> to vector<1x32xf32>
      %28 = vector.broadcast %27 : vector<1x32xf32> to vector<8x32xf32>
      %29 = arith.addf %25, %28 : vector<8x32xf32>
      %cst_26 = arith.constant 0.000000e+00 : f32
      %30 = vector.broadcast %cst_26 : f32 to vector<8x32xf32>
      %31 = arith.maximumf %29, %30 : vector<8x32xf32>
      %32 = arith.truncf %31 : vector<8x32xf32> to vector<8x32xbf16>
      %c0_27 = arith.constant 0 : index
      %c0_28 = arith.constant 0 : index
      %33 = vector.load %arg12[%c0_27, %c0_28] : memref<8x32xbf16, #tpu.memory_space<vmem>>, vector<8x32xbf16>
      tpu.vector_store %arg12[%c0_27, %c0_28], %32 {strides = array<i32>} : memref<8x32xbf16, #tpu.memory_space<vmem>>, vector<8x32xbf16>,
    } else {
    }
    %c0 = arith.constant 0 : index
    %c0_0 = arith.constant 0 : index
    %5 = vector.load %arg12[%c0, %c0_0] : memref<8x32xbf16, #tpu.memory_space<vmem>>, vector<8x32xbf16>
    %c0_1 = arith.constant 0 : index
    %c0_2 = arith.constant 0 : index
    %6 = vector.load %arg9[%c0_1, %c0_2] : memref<32x128xbf16, #tpu.memory_space<vmem>>, vector<32x128xbf16>
    %cst = arith.constant dense<0.000000e+00> : vector<8x128xf32>
    %7 = tpu.matmul %5, %6, %cst {dimension_numbers = #tpu.dot_dimension_numbers<[1], [0], [0], [1], [0, 0, 1, 1], [], []>} : vector<8x32xbf16>, vector<32x128xbf16>, vector<8x128xf32> -> vector<8x128xf32>
    %c0_3 = arith.constant 0 : index
    %c0_4 = arith.constant 0 : index
    %8 = vector.load %arg10[%c0_3, %c0_4] : memref<1x128xf32, #tpu.memory_space<vmem>>, vector<1x128xf32>
    %9 = vector.broadcast %8 : vector<1x128xf32> to vector<8x128xf32>
    %10 = arith.addf %7, %9 : vector<8x128xf32>
    %c0_5 = arith.constant 0 : index
    %c0_6 = arith.constant 0 : index
    %11 = vector.load %arg11[%c0_5, %c0_6] : memref<8x128xf32, #tpu.memory_space<vmem>>, vector<8x128xf32>
    tpu.vector_store %arg11[%c0_5, %c0_6], %10 {strides = array<i32>} : memref<8x128xf32, #tpu.memory_space<vmem>>, vector<8x128xf32>,
    return
  }
  func.func @transform_0(%arg0: i32, %arg1: memref<4xi32, #tpu.memory_space<smem>>, %arg2: memref<4xi32, #tpu.memory_space<smem>>, %arg3: memref<4xi32, #tpu.memory_space<smem>>) -> (i32, i32) {
    %c0_i32 = arith.constant 0 : i32
    %c0_i32_0 = arith.constant 0 : i32
    %c0_i32_1 = arith.constant 0 : i32
    return %c0_i32, %c0_i32_0 : i32, i32
  }
  func.func @transform_1(%arg0: i32, %arg1: memref<4xi32, #tpu.memory_space<smem>>, %arg2: memref<4xi32, #tpu.memory_space<smem>>, %arg3: memref<4xi32, #tpu.memory_space<smem>>) -> (i32, i32, i32) {
    %0 = arith.index_cast %arg0 : i32 to index
    %1 = memref.load %arg1[%0] : memref<4xi32, #tpu.memory_space<smem>>
    %c0_i32 = arith.constant 0 : i32
    %c0_i32_0 = arith.constant 0 : i32
    %c0_i32_1 = arith.constant 0 : i32
    return %1, %c0_i32, %c0_i32_0 : i32, i32, i32
  }
  func.func @transform_2(%arg0: i32, %arg1: memref<4xi32, #tpu.memory_space<smem>>, %arg2: memref<4xi32, #tpu.memory_space<smem>>, %arg3: memref<4xi32, #tpu.memory_space<smem>>) -> (i32, i32, i32) {
    %0 = arith.index_cast %arg0 : i32 to index
    %1 = memref.load %arg1[%0] : memref<4xi32, #tpu.memory_space<smem>>
    %c0_i32 = arith.constant 0 : i32
    %c0_i32_0 = arith.constant 0 : i32
    %c0_i32_1 = arith.constant 0 : i32
    return %1, %c0_i32, %c0_i32_0 : i32, i32, i32
  }
  func.func @transform_3(%arg0: i32, %arg1: memref<4xi32, #tpu.memory_space<smem>>, %arg2: memref<4xi32, #tpu.memory_space<smem>>, %arg3: memref<4xi32, #tpu.memory_space<smem>>) -> (i32, i32, i32, i32) {
    %0 = arith.index_cast %arg0 : i32 to index
    %1 = memref.load %arg1[%0] : memref<4xi32, #tpu.memory_space<smem>>
    %c0_i32 = arith.constant 0 : i32
    %c0_i32_0 = arith.constant 0 : i32
    %c0_i32_1 = arith.constant 0 : i32
    %c0_i32_2 = arith.constant 0 : i32
    return %1, %c0_i32, %c0_i32_0, %c0_i32_1 : i32, i32, i32, i32
  }
  func.func @transform_4(%arg0: i32, %arg1: memref<4xi32, #tpu.memory_space<smem>>, %arg2: memref<4xi32, #tpu.memory_space<smem>>, %arg3: memref<4xi32, #tpu.memory_space<smem>>) -> (i32, i32, i32, i32) {
    %0 = arith.index_cast %arg0 : i32 to index
    %1 = memref.load %arg1[%0] : memref<4xi32, #tpu.memory_space<smem>>
    %c0_i32 = arith.constant 0 : i32
    %c0_i32_0 = arith.constant 0 : i32
    %c0_i32_1 = arith.constant 0 : i32
    %c0_i32_2 = arith.constant 0 : i32
    return %1, %c0_i32, %c0_i32_0, %c0_i32_1 : i32, i32, i32, i32
  }
  func.func @transform_5(%arg0: i32, %arg1: memref<4xi32, #tpu.memory_space<smem>>, %arg2: memref<4xi32, #tpu.memory_space<smem>>, %arg3: memref<4xi32, #tpu.memory_space<smem>>) -> (i32, i32) {
    %0 = arith.index_cast %arg0 : i32 to index
    %1 = memref.load %arg2[%0] : memref<4xi32, #tpu.memory_space<smem>>
    %c0_i32 = arith.constant 0 : i32
    %c0_i32_0 = arith.constant 0 : i32
    return %c0_i32, %1 : i32, i32
  }
  func.func @transform_6(%arg0: i32, %arg1: memref<4xi32, #tpu.memory_space<smem>>, %arg2: memref<4xi32, #tpu.memory_space<smem>>, %arg3: memref<4xi32, #tpu.memory_space<smem>>) -> (i32, i32) {
    %0 = arith.index_cast %arg0 : i32 to index
    %1 = memref.load %arg2[%0] : memref<4xi32, #tpu.memory_space<smem>>
    %c0_i32 = arith.constant 0 : i32
    %c0_i32_0 = arith.constant 0 : i32
    return %c0_i32, %1 : i32, i32
  }
  func.func @transform_7(%arg0: i32, %arg1: memref<4xi32, #tpu.memory_space<smem>>, %arg2: memref<4xi32, #tpu.memory_space<smem>>, %arg3: memref<4xi32, #tpu.memory_space<smem>>) -> (i32, i32) {
    %0 = arith.index_cast %arg0 : i32 to index
    %1 = memref.load %arg2[%0] : memref<4xi32, #tpu.memory_space<smem>>
    %c0_i32 = arith.constant 0 : i32
    %c0_i32_0 = arith.constant 0 : i32
    return %c0_i32, %1 : i32, i32
  }
}

</mosaic_0001>

<bundles_post_ra>
// kernel: tpu_custom_call.1
= control target key start
LH: loop header
LB: loop body
LE: loop exit
PB: predicated region body
PF: predicated region fallthrough
CT: control target
= control target key end

     0   :  { %s1405_s19 = smov [#allocation4]   ;;  %s1406_s20 = smov [#allocation5]   ;;  %s1989_s0 = inlined_call_operand.hbm [shape: s32[4], index: 0, kind: input, shape index: {}]   ;;  %s1990_s3 = inlined_call_operand.hbm [shape: bf16[8,8], index: 3, kind: input, shape index: {}]   ;;  %s1991_s4 = inlined_call_operand.hbm [shape: bf16[4,8,32], index: 4, kind: input, shape index: {}]   ;;  %s1992_s5 = inlined_call_operand.vmem [shape: f32[4,1,32], index: 5, kind: input, shape index: {}]   ;;  %s1993_s6 = inlined_call_operand.hbm [shape: bf16[4,1,32,32], index: 6, kind: input, shape index: {}]   ;;  %s1994_s7 = inlined_call_operand.hbm [shape: f32[4,1,1,32], index: 7, kind: input, shape index: {}]   ;;  %s1995_s8 = inlined_call_operand.hbm [shape: bf16[32,512], index: 8, kind: input, shape index: {}]   ;;  %s1996_s9 = inlined_call_operand.vmem [shape: f32[1,512], index: 9, kind: input, shape index: {}]   ;;  %s1997_s10 = inlined_call_operand.hbm [shape: f32[8,512], index: 10, kind: output, shape index: {}]   ;;  %s1998_s1 = inlined_call_operand.hbm [shape: s32[4], index: 1, kind: input, shape index: {}]   ;;  %s1999_s2 = inlined_call_operand.hbm [shape: s32[4], index: 2, kind: input, shape index: {}]  }
   0x1   :  { %2020 = sst [smem:[#allocation46_spill]] %s1990_s3  ;;  %s16_s15 = sshll.u32 %s1989_s0, 4  ;;  %s17_s15 = int_to_ptr.hbm [resolvable:$true] %s16_s15 }
   0x2   :  { %2021 = sst [smem:[#allocation47_spill]] %s1991_s4  ;;  %s21_s18 = sshll.u32 %s1998_s1, 4  ;;  %s22_s18 = int_to_ptr.hbm [resolvable:$true] %s21_s18 }
   0x3   :  { %2022 = sst [smem:[#allocation48_spill]] %s1992_s5  ;;  %s26_s23 = sshll.u32 %s1999_s2, 4  ;;  %s27_s23 = int_to_ptr.hbm [resolvable:$true] %s26_s23 }
   0x4   :  { %2023 = sst [smem:[#allocation49_spill]] %s1993_s6  ;;  %s1407_s24 = smov [#allocation6]  }
   0x5   :  { %2024 = sst [smem:[#allocation50_spill]] %s1994_s7 }
   0x6   :  { %2025 = sst [smem:[#allocation51_spill]] %s1995_s8 }
   0x7   :  { %2026 = sst [smem:[#allocation52_spill]] %s1996_s9 }
   0x8   :  { %2027 = sst [smem:[#allocation53_spill]] %s1997_s10 }
   0x9   :  { %19 = dma.hbm_to_smem %s17_s15, 16, %s1405_s19, [#allocation3] }
   0xa   :  { %24 = dma.hbm_to_smem %s22_s18, 16, %s1406_s20, [#allocation3] }
   0xb   :  { %29 = dma.hbm_to_smem %s27_s23, 16, %s1407_s24, [#allocation3] }
   0xc   :  { %1315 = dma.done.wait [#allocation3], 48 }
   0xd   :  { %1316 = vsyncadd [#allocation3], 4294967248 }
   0xe   :  { %32 = sfence }
   0xf   :  { %33 = vsyncpa [#allocation8], 0 }
  0x10   :  { %34 = vsyncpa [#allocation11], 0 }
  0x11   :  { %36 = vsyncpa [#allocation11 + $0x1], 0 }
  0x12   :  { %37 = vsyncpa [#allocation14], 0 }
  0x13   :  { %39 = vsyncpa [#allocation14 + $0x1], 0 }
  0x14   :  { %40 = vsyncpa [#allocation9], 0 }
  0x15   :  { %42 = vsyncpa [#allocation9 + $0x1], 0  ;;  %s1476_s0 = smov 0   ;;  %s1478_s1 = smov 0  }
  0x16   :  { %s1480_s25 = smov 0   ;;  %s1482_s2 = smov 0  }
  0x17   :  { %s1484_s26 = smov 0   ;;  %s1486_s27 = smov 0  }
  0x18   :  { %s1488_s28 = smov 0   ;;  %s1490_s29 = smov 0  }
  0x19   :  { %s1492_s30 = smov 0   ;;  %s1494_s11 = smov 0  }
  0x1a   :  { %s1496_s12 = smov 0   ;;  %s1498_s13 = smov 0  }
  0x1b   :  { %s1500_s14 = smov 0   ;;  %s1502_s15 = smov 0  }
  0x1c   :  { %s1504_s16 = smov 0   ;;  %s1506_s17 = smov 0  }
  0x1d LB: > { %2028 = sst [smem:[#allocation33_spill]] %s1343_s0  ;;  %s1555_s18 = sadd.s32 4294967295, %s1403_s17   ;;  %s1403_s17 = sphi %s1506_s17, %s2116_s17   ;;  %s1399_s16 = sphi %s1504_s16, %s2104_s16   ;;  %s1395_s15 = sphi %s1502_s15, %s2115_s15   ;;  %s1391_s14 = sphi %s1500_s14, %s2102_s14   ;;  %s1387_s13 = sphi %s1498_s13, %s2114_s13   ;;  %s1383_s12 = sphi %s1496_s12, %s2113_s12   ;;  %s1379_s11 = sphi %s1494_s11, %s2112_s11   ;;  %s1375_s30 = sphi %s1492_s30, %s2099_s30   ;;  %s1371_s29 = sphi %s1490_s29, %s2111_s29   ;;  %s1367_s28 = sphi %s1488_s28, %s2110_s28   ;;  %s1363_s27 = sphi %s1486_s27, %s2109_s27   ;;  %s1359_s26 = sphi %s1484_s26, %s2108_s26   ;;  %s1355_s2 = sphi %s1482_s2, %s2107_s2   ;;  %s1351_s25 = sphi %s1480_s25, %s2097_s25   ;;  %s1347_s1 = sphi %s1478_s1, %s2106_s1   ;;  %s1343_s0 = sphi %s1476_s0, %s2105_s0  }
  0x1e   : > { %2029 = sst [smem:[#allocation34_spill]] %s1351_s25  ;;  %s796_s19 = sadd.s32 4294967294, %s1403_s17  }
  0x1f   : > { %2030 = sst [smem:[#allocation35_spill]] %s1355_s2  ;;  %s1559_s20 = sadd.s32 1, %s1403_s17  }
  0x20   : > { %2031 = sst [smem:[#allocation36_spill]] %s1375_s30  ;;  %s78_s23 = sadd.s32 1, %s1399_s16 }
  0x21   : > { %2032 = sst [smem:[#allocation37_spill]] %s1387_s13  ;;  %p85_p0 = scmp.ne.s32.totalorder %s1399_s16, %s1395_s15 }
  0x22   : > { %2033 = sst [smem:[#allocation38_spill]] %s1395_s15  ;;  %p2010_p1 = scmp.eq.s32.totalorder %s1403_s17, 0 }
  0x23   : > { %2034 = sst [smem:[#allocation39_spill]] %s1399_s16  ;;  %p91_p2 = scmp.ne.s32.totalorder %s1395_s15, %s1391_s14 }
  0x24   : > { %s73_s21 = sld [smem:[#allocation4 + %s1403_s17]]  ;;  %p2011_p3 = scmp.eq.s32.totalorder %s1555_s18, 0 }
  0x25   : > { %s74_s22 = sld [smem:[#allocation4 + %s1559_s20]]  ;;  %p1571_p4 = por %p2010_p1, %p85_p0 }
  0x26   : > { %s241_s10 = sld [smem:[#allocation5 + %s1403_s17]]  ;;  %p1578_p5 = por %p2011_p3, %p91_p2 }
  0x27   : > { %s242_s5 = sld [smem:[#allocation5 + %s1559_s20]]  ;;  %s246_s8 = sadd.s32 1, %s1351_s25 }
  0x28   : > { %s2036_s9 = scalar_select %p1578_p5, 1, 0 }
  0x29   : > { %p256_p6 = scmp.ne.s32.totalorder %s1351_s25, %s1347_s1  ;;  %p257_p7 = scmp.eq.s32.totalorder %s1555_s18, 3 }
  0x2a   : > { %2037 = sst [smem:[#allocation40_spill]] %s2036_s9  ;;  %p262_p9 = scmp.ne.s32.totalorder %s1347_s1, %s1343_s0 }
  0x2b   : > { %s75_s14 = ssub.s32 %s73_s21, %s74_s22  ;;  %p1589_p10 = por %p257_p7, %p256_p6 }
  0x2c   : > { %p76_p8 = scmp.eq.s32.totalorder %s75_s14, 0  ;;  %p263_p11 = scmp.eq.s32.totalorder %s796_s19, 3 }
  0x2d   : > { %s2038_s15 = scalar_select %p1589_p10, 1, 0 }
  0x2e   : > { %s1594_s9 = scalar_select %p76_p8, %s1399_s16, %s78_s23  }
  0x2f   : > { %s243_s6 = ssub.s32 %s241_s10, %s242_s5  ;;  %p1596_p12 = por %p263_p11, %p262_p9 }
  0x30   : > { %2039 = sst [smem:[#allocation41_spill]] %s1594_s9  ;;  %p244_p13 = scmp.eq.s32.totalorder %s243_s6, 0 }
  0x31   : > { %s2040_s2 = scalar_select %p1596_p12, 1, 0 }
  0x32   : > { %p2012_p0 = scmp.lt.s32.totalorder %s1403_s17, 4  ;;  %s297_s14 = sand.u32 1, %s1399_s16  }
  0x33   : > { %2041 = sst [smem:[#allocation42_spill]] %s2040_s2  ;;  %s800_s19 = sshll.u32 %s297_s14, 2 }
  0x34   : > { %s1602_s21 = scalar_select %p244_p13, %s1351_s25, %s246_s8  }
  0x35   : > { %p1610_p2 = pnand %p2012_p0, %p1571_p4  ;;  %s299_s8 = scalar_lea.vmem [#allocation10], %s800_s19 }
  0x36   : > { %2042 = sst [smem:[#allocation43_spill]] %s1602_s21  ;;  %s1623_s23 = sshll.u32 %s299_s8, 4  ;;  %s309_s23 = int_to_ptr.vmem [resolvable:$true] %s1623_s23 }
  0x37   : > { %s844_s6 = scalar_select %p1571_p4, [#allocation4], [#allocation17] }
  0x38   : > { %s845_s10 = scalar_select %p1571_p4, %s1403_s17, 0 }
  0x39   : > { %s2118_s6 = smov (!%p2012_p0, %s844_s6), [#allocation22]  ;;  %s157_s22 = sld [smem:[#allocation4 + %s1403_s17]] }
  0x3a   : > { %s2120_s10 = smov (!%p2012_p0, %s845_s10), 0  ;;  %s158_s16 = sld [smem:[#allocation4 + %s1559_s20]] }
  0x3b   : > { %s300_s14 = sld [smem:[%s2118_s6 + %s2120_s10]]  ;;  %p169_p6 = scmp.ne.s32.totalorder %s1375_s30, %s1371_s29 }
  0x3c   : > { %p175_p7 = scmp.ne.s32.totalorder %s1371_s29, %s1367_s28  ;;  %s2044_s4 = sld [smem:[#allocation47_spill]] }
  0x3d   : > { %p1638_p4 = por %p169_p6, %p2010_p1  ;;  %s2047_s10 = sand.u32 1, %s1403_s17  }
  0x3e   : > { %p1644_p8 = por %p175_p7, %p2011_p3  ;;  %s1650_s8 = scalar_lea.sflag [#allocation11], %s2047_s10 }
  0x3f   : > { %p1077_p11 = pneg %p1610_p2 }
  0x40   : > { %s2046_s6 = scalar_select %p1644_p8, 1, 0 }
  0x41   : > { %s801_s21 = sshll.u32 %s300_s14, 2 }
  0x42   : > { %s304_s2 = scalar_lea.hbm %s2044_s4, %s801_s21 }
  0x43   : > { %s306_s19 = sshll.u32 %s304_s2, 4  ;;  %s1080_s2 = scalar_lea.hbm %s2044_s4, 16  ;;  %s307_s19 = int_to_ptr.hbm [resolvable:$true] %s306_s19 }
  0x44   : > { %s1073_s28 = sshra.s32 %s307_s19, 4  ;;  %s1074_s28 = int_to_ptr.hbm [resolvable:$true] %s1073_s28 }
  0x45   : > { %s1075_s14 = scalar_lea.hbm %s1074_s28, 4  ;;  %p1081_p7 = scmp.lt.s32.totalorder %s1074_s28, %s2044_s4 }
  0x46   : > { %p1076_p9 = scmp.ne.s32.totalorder %s1074_s28, %s1075_s14  ;;  %p1082_p1 = scmp.lt.s32.totalorder %s1080_s2, %s1075_s14 }
  0x48   : > { %p1078_p13 = pnand %p1077_p11, %p1076_p9  ;;  %p1083_p3 = por %p1082_p1, %p1081_p7 }
  0x4a   : > { %p1079_p6 = pneg %p1078_p13 }
  0x4c   : > { %p1084_p0 = pnand %p1083_p3, %p1079_p6 }
  0x4e   : > { %1087 = shalt.err (!%p1084_p0)
}
  0x4f   : > { %875 = dma.hbm_to_vmem [thread:$0]  (!%p1610_p2), %s307_s19, 64, %s309_s23, %s1650_s8  }
  0x50   : > { %s159_s9 = ssub.s32 %s157_s22, %s158_s16  ;;  %s348_s10 = sand.u32 1, %s1375_s30  }
  0x51   : > { %p160_p1 = scmp.eq.s32.totalorder %s159_s9, 0  ;;  %s2048_s5 = sadd.s32 1, %s1375_s30 }
  0x52   : > { %s850_s28 = scalar_select %p1638_p4, [#allocation4], [#allocation19] }
  0x53   : > { %s1669_s14 = scalar_select %p160_p1, %s1375_s30, %s2048_s5  }
  0x54   : > { %s851_s25 = scalar_select %p1638_p4, %s1403_s17, 0 }
  0x55   : > { %2049 = sst [smem:[#allocation44_spill]] %s1669_s14  ;;  %p2050_p3 = scmp.lt.s32.totalorder %s1403_s17, 4 }
  0x56   : > { %s349_s21 = scalar_lea.vmem [#allocation13], %s348_s10  ;;  %p797_p11 = scmp.ge.s32.totalorder %s1403_s17, 1 }
  0x57   : > { %s2122_s28 = smov (!%p2050_p3, %s850_s28), [#allocation24]  ;;  %p2051_p0 = pmov %p2050_p3 }
  0x58   : > { %s357_s2 = sshll.u32 %s349_s21, 4  ;;  %p270_p13 = scmp.lt.s32.totalorder %s1403_s17, 5  ;;  %s1686_s2 = int_to_ptr.vmem [resolvable:$true] %s357_s2 }
  0x59   : > { %s2124_s25 = smov (!%p2051_p0, %s851_s25), 0  ;;  %p2052_p9 = pmov %p2051_p0 }
  0x5a   : > { %s350_s22 = sld [smem:[%s2122_s28 + %s2124_s25]]  ;;  %p1693_p6 = pnand %p797_p11, %p270_p13 }
  0x5b   : > { %p1682_p2 = pnand %p2052_p9, %p1638_p4  ;;  %s2054_s3 = sld [smem:[#allocation46_spill]] }
  0x5c   : > { %s1408_s9 = smov [#allocation7]   ;;  %s2056_s7 = sld [smem:[#allocation50_spill]] }
  0x5d   : > { %s284_s10 = sshll.u32 %s1408_s9, 4  ;;  %p866_p4 = pneg %p1693_p6  ;;  %s285_s10 = int_to_ptr.vmem [resolvable:$true] %s284_s10 }
  0x5e   : > { %p2057_p7 = scmp.eq.s32.totalorder %s1555_s18, 0  ;;  %s2059_s19 = sand.u32 1, %s1403_s17  }
  0x5f   : > { %p1107_p0 = pneg %p1682_p2 }
  0x60   : > { %p1704_p1 = pnand %p866_p4, %p2057_p7 }
  0x61   : > { %s282_s24 = sshll.u32 %s2054_s3, 4  ;;  %s1710_s3 = scalar_lea.sflag [#allocation14], %s2059_s19  ;;  %s283_s24 = int_to_ptr.hbm [resolvable:$true] %s282_s24 }
  0x62   : > { %s353_s25 = scalar_lea.hbm %s2056_s7, %s350_s22  ;;  %s1110_s28 = scalar_lea.hbm %s2056_s7, 4 }
  0x63   : > { %s355_s21 = sshll.u32 %s353_s25, 4  ;;  %s356_s21 = int_to_ptr.hbm [resolvable:$true] %s355_s21 }
  0x64   : > { %s1103_s4 = sshra.s32 %s356_s21, 4  ;;  %s1104_s4 = int_to_ptr.hbm [resolvable:$true] %s1103_s4 }
  0x65   : > { %s1105_s9 = scalar_lea.hbm %s1104_s4, 1  ;;  %p1111_p13 = scmp.lt.s32.totalorder %s1104_s4, %s2056_s7 }
  0x66   : > { %p1106_p3 = scmp.ne.s32.totalorder %s1104_s4, %s1105_s9  ;;  %p1112_p4 = scmp.lt.s32.totalorder %s1110_s28, %s1105_s9 }
  0x68   : > { %p1108_p9 = pnand %p1107_p0, %p1106_p3  ;;  %p1113_p7 = por %p1112_p4, %p1111_p13 }
  0x6a   : > { %p1109_p11 = pneg %p1108_p9 }
  0x6c   : > { %p1114_p12 = pnand %p1113_p7, %p1109_p11 }
  0x6e   : > { %1117 = shalt.err (!%p1114_p12)
}
  0x6f   : > { %885 = dma.hbm_to_vmem [thread:$0]  (!%p1682_p2), %s356_s21, 16, %s1686_s2, %s1710_s3  }
  0x70   : > { %869 = dma.hbm_to_vmem [thread:$0]  (!%p1704_p1), %s283_s24, 64, %s285_s10, [#allocation8]  }
  0x71   : > { %s129_s4 = sld [smem:[#allocation4 + %s1403_s17]]  ;;  %p141_p12 = scmp.ne.s32.totalorder %s1387_s13, %s1383_s12 }
  0x72   : > { %s130_s14 = sld [smem:[#allocation4 + %s1559_s20]]  ;;  %p147_p3 = scmp.ne.s32.totalorder %s1383_s12, %s1379_s11 }
  0x73   : > { %s325_s16 = sand.u32 1, %s1387_s13   ;;  %p2060_p0 = scmp.eq.s32.totalorder %s1555_s18, 0 }
  0x74   : > { %p2062_p11 = scmp.eq.s32.totalorder %s1403_s17, 0  ;;  %s802_s2 = sshll.u32 %s325_s16, 4 }
  0x75   : > { %p1735_p9 = por %p147_p3, %p2060_p0  ;;  %s2063_s24 = sld [smem:[#allocation35_spill]] }
  0x76   : > { %p143_p13 = por %p141_p12, %p2062_p11  ;;  %s134_s10 = sadd.s32 1, %s1387_s13 }
  0x77   : > { %p2064_p1 = scmp.lt.s32.totalorder %s1403_s17, 4  ;;  %s327_s28 = scalar_lea.vmem [#allocation12], %s802_s2 }
  0x78   : > { %s131_s21 = ssub.s32 %s129_s4, %s130_s14  ;;  %s1756_s25 = sshll.u32 %s327_s28, 4  ;;  %s337_s25 = int_to_ptr.vmem [resolvable:$true] %s1756_s25 }
  0x79   : > { %p132_p2 = scmp.eq.s32.totalorder %s131_s21, 0  ;;  %p1744_p4 = pnand %p2064_p1, %p143_p13 }
  0x7a   : > { %s847_s23 = scalar_select %p143_p13, [#allocation4], [#allocation18] }
  0x7b   : > { %s1749_s9 = scalar_select %p132_p2, %s1387_s13, %s134_s10  }
  0x7c   : > { %s848_s22 = scalar_select %p143_p13, %s1403_s17, 0 }
  0x7d   : > { %2066 = sst [smem:[#allocation45_spill]] %s1749_s9  ;;  %p2067_p7 = pmov %p2064_p1 }
  0x7e   : > { %p2068_p12 = pmov %p2064_p1  ;;  %s1759_s4 = sld [smem:[#allocation5 + %s1403_s17]] }
  0x7f   : > { %s2126_s23 = smov (!%p2067_p7, %s847_s23), [#allocation23]  ;;  %s1762_s14 = sld [smem:[#allocation5 + %s1559_s20]] }
  0x80   : > { %s2128_s22 = smov (!%p2068_p12, %s848_s22), 0  ;;  %p197_p3 = scmp.ne.s32.totalorder %s1363_s27, %s1359_s26 }
  0x81   : > { %s328_s5 = sld [smem:[%s2126_s23 + %s2128_s22]]  ;;  %p203_p0 = scmp.ne.s32.totalorder %s1359_s26, %s2063_s24 }
  0x82   : > { %s2069_s7 = sld [smem:[#allocation49_spill]]  ;;  %p2070_p11 = scmp.eq.s32.totalorder %s1555_s18, 0 }
  0x83   : > { %s366_s22 = sand.u32 1, %s1363_s27   ;;  %p2072_p2 = scmp.eq.s32.totalorder %s1403_s17, 0 }
  0x84   : > { %p1774_p13 = por %p203_p0, %p2070_p11  ;;  %p1167_p12 = pneg %p1744_p4 }
  0x85   : > { %p1781_p1 = por %p197_p3, %p2072_p2 }
  0x87   : > { %s837_s16 = sshll.u32 %s328_s5, 4 }
  0x88   : > { %s333_s9 = scalar_lea.hbm %s2069_s7, %s837_s16  ;;  %s1170_s21 = scalar_lea.hbm %s2069_s7, 64 }
  0x89   : > { %s334_s2 = sshll.u32 %s333_s9, 4  ;;  %s335_s2 = int_to_ptr.hbm [resolvable:$true] %s334_s2 }
  0x8a   : > { %s1163_s24 = sshra.s32 %s335_s2, 4  ;;  %s1164_s24 = int_to_ptr.hbm [resolvable:$true] %s1163_s24 }
  0x8b   : > { %s1165_s5 = scalar_lea.hbm %s1164_s24, 16  ;;  %p1171_p0 = scmp.lt.s32.totalorder %s1164_s24, %s2069_s7 }
  0x8c   : > { %p1166_p7 = scmp.ne.s32.totalorder %s1164_s24, %s1165_s5  ;;  %p1172_p3 = scmp.lt.s32.totalorder %s1170_s21, %s1165_s5 }
  0x8e   : > { %p1168_p10 = pnand %p1167_p12, %p1166_p7  ;;  %p1173_p11 = por %p1172_p3, %p1171_p0 }
  0x90   : > { %p1169_p8 = pneg %p1168_p10 }
  0x92   : > { %p1174_p2 = pnand %p1173_p11, %p1169_p8 }
  0x94   : > { %1177 = shalt.err (!%p1174_p2)
}
  0x95   : > { %s2017_s30 = smov 64   ;;  %s2018_s13 = smov 4  }
  0x96   : > { %880 = dma.hbm_to_vmem [thread:$0]  (!%p1744_p4), %s335_s2, 256, %s337_s25, %s1650_s8, %s2017_s30, %s2017_s30, %s2018_s13  }
  0x97   : > { %s187_s24 = ssub.s32 %s1759_s4, %s1762_s14  ;;  %s190_s5 = sadd.s32 1, %s1363_s27 }
  0x98   : > { %p188_p10 = scmp.eq.s32.totalorder %s187_s24, 0  ;;  %s805_s16 = sshll.u32 %s366_s22, 4 }
  0x99   : > { %s853_s10 = scalar_select %p1781_p1, [#allocation5], [#allocation20] }
  0x9a   : > { %s1805_s21 = scalar_select %p188_p10, %s1363_s27, %s190_s5  }
  0x9b   : > { %s854_s9 = scalar_select %p1781_p1, %s1403_s17, 0 }
  0x9c   : > { %p2074_p8 = scmp.lt.s32.totalorder %s1403_s17, 4  ;;  %s368_s25 = scalar_lea.vmem [#allocation15], %s805_s16 }
  0x9d   : > { %s376_s4 = sshll.u32 %s368_s25, 4  ;;  %s2078_s24 = sld [smem:[#allocation51_spill]]  ;;  %s377_s4 = int_to_ptr.vmem [resolvable:$true] %s376_s4 }
  0x9e   : > { %s2130_s10 = smov (!%p2074_p8, %s853_s10), [#allocation25]  ;;  %p2075_p7 = pmov %p2074_p8 }
  0xa0   : > { %s2132_s9 = smov (!%p2075_p7, %s854_s9), 0  ;;  %p2076_p12 = pmov %p2075_p7 }
  0xa1   : > { %s369_s8 = sld [smem:[%s2130_s10 + %s2132_s9]] }
  0xa2   : > { %p1818_p0 = pnand %p2076_p12, %p1781_p1 }
  0xa3   : > { %s1200_s16 = scalar_lea.hbm %s2078_s24, 64 }
  0xa4   : > { %p1197_p1 = pneg %p1818_p0 }
  0xa7   : > { %s806_s14 = sshll.u32 %s369_s8, 2 }
  0xa8   : > { %s373_s5 = scalar_lea.hbm %s2078_s24, %s806_s14 }
  0xa9   : > { %s374_s30 = sshll.u32 %s373_s5, 4  ;;  %s375_s30 = int_to_ptr.hbm [resolvable:$true] %s374_s30 }
  0xaa   : > { %s1193_s13 = sshra.s32 %s375_s30, 4  ;;  %s1194_s13 = int_to_ptr.hbm [resolvable:$true] %s1193_s13 }
  0xab   : > { %s1195_s28 = scalar_lea.hbm %s1194_s13, 16  ;;  %p1201_p2 = scmp.lt.s32.totalorder %s1194_s13, %s2078_s24 }
  0xac   : > { %p1196_p4 = scmp.ne.s32.totalorder %s1194_s13, %s1195_s28  ;;  %p1202_p10 = scmp.lt.s32.totalorder %s1200_s16, %s1195_s28 }
  0xae   : > { %p1198_p3 = pnand %p1197_p1, %p1196_p4  ;;  %p1203_p8 = por %p1202_p10, %p1201_p2 }
  0xb0   : > { %p1199_p11 = pneg %p1198_p3 }
  0xb2   : > { %p1204_p7 = pnand %p1203_p8, %p1199_p11 }
  0xb4   : > { %1207 = shalt.err (!%p1204_p7)
}
  0xb5   : > { %s1411_s25 = smov 256   ;;  %s2079_s14 = smov 4  }
  0xb6   : > { %s2080_s2 = smov 64   ;;  %396 = sbr.rel (%p1693_p6) target bundleno = 638 (0x27e), region = 48 }
  0xb7   : > { %890 = dma.hbm_to_vmem [thread:$0]  (!%p1818_p0), %s375_s30, 256, %s377_s4, %s1710_s3, %s1411_s25, %s2080_s2, %s2079_s14  }
  0xb8   : > { %p2081_p12 = scmp.eq.s32.totalorder (!%p1693_p6), %s1555_s18, 0 }
  0xbb   : > { %1318 = dma.done.wait (%p2081_p12), [#allocation8], 64   ;;  %p2082_p4 = pmov %p2081_p12 }
  0xbc   : > { %s2083_s7 = sld [smem:[#allocation38_spill]]  ;;  %s403_s22 = sand.u32 1, %s1555_s18  }
  0xbd   : > { %1320 = vsyncadd (%p2082_p4), [#allocation8], 4294967232  ;;  %s404_s11 = scalar_lea.sflag [#allocation11], %s403_s22 }
  0xc2   : > { %s405_s5 = sand.u32 1, %s2083_s7  }
  0xc3   : > { %s1846_s28 = sshll.u32 %s405_s5, 2 }
  0xc4   : > { %s407_s10 = scalar_lea.vmem [#allocation10], %s1846_s28 }
  0xc5   : > { %1322 = dma.done.wait (%p1578_p5), %s404_s11, 64  }
  0xc6   : > { %1324 = vsyncadd (%p1578_p5), %s404_s11, 4294967232  ;;  %s415_s3 = sand.u32 1, %s1383_s12  }
  0xc7   : > { %s1854_s30 = sshll.u32 %s415_s3, 4 }
  0xc8   : > { %s417_s0 = scalar_lea.vmem [#allocation12], %s1854_s30 }
  0xc9   : > { %1326 = dma.done.wait (%p1735_p9), %s404_s11, 256  }
  0xca   : > { %1328 = vsyncadd (%p1735_p9), %s404_s11, 4294967040  ;;  %s425_s4 = sand.u32 1, %s1371_s29   ;;  %s424_s16 = scalar_lea.sflag [#allocation14], %s403_s22 }
  0xcb   : > { %s1862_s9 = scalar_lea.vmem [#allocation13], %s425_s4  ;;  %p2085_p6 = scmp.ne.s32.totalorder %s2046_s6, 0 }
  0xcd   : > { %1330 = dma.done.wait (%p2085_p6), %s424_s16, 16  }
  0xce   : > { %1332 = vsyncadd (%p2085_p6), %s424_s16, 4294967280  ;;  %s434_s8 = sand.u32 1, %s1359_s26  }
  0xcf   : > { %s1869_s25 = sshll.u32 %s434_s8, 4 }
  0xd0   : > { %1334 = dma.done.wait (%p1774_p13), %s424_s16, 256  }
  0xd1   : > { %1336 = vsyncadd (%p1774_p13), %s424_s16, 4294967040  ;;  %s487_s19 = sand.u32 1, %s1347_s1   ;;  %s491_s6 = sld [smem:[#allocation4 + %s1555_s18]] }
  0xd2   : > { %s1880_s2 = sshll.u32 %s487_s19, 3  ;;  %s499_s7 = sld [smem:[#allocation5 + %s1555_s18]] }
  0xd3   : > { %s506_s13 = sld [smem:[#allocation6 + %s1555_s18]]  ;;  %s489_s14 = scalar_lea.vmem [#allocation16], %s1880_s2 }
  0xd4   : > { %s2086_s5 = sld [smem:[#allocation48_spill]] }
  0xd5   : > { %s2087_s16 = sld [smem:[#allocation52_spill]] }
  0xd7   : > { %p492_p5 = scmp.lt.s32.totalorder %s491_s6, 3 }
  0xd8   : > { %p500_p9 = scmp.lt.s32.totalorder %s499_s7, 3 }
  0xd9   : > { %s2134_s6 = smov (!%p492_p5, %s491_s6), 3  ;;  %p813_p13 = scmp.ne.s32.totalorder %s506_s13, 1 }
  0xda   : > { %s2136_s7 = smov (!%p500_p9, %s499_s7), 3  ;;  %s494_s11 = scalar_lea.vmem %s2086_s5, %s2134_s6 }
  0xdb   : > { %s502_s8 = scalar_lea.vmem %s2087_s16, %s2136_s7  ;;  %510 = sbr.rel (%p813_p13) target bundleno = 495 (0x1ef), region = 72 }
  0xe0   : > { %v512_v0 = vld [vmem:[%s407_s10] sm:$0xf]  ;;  %vm521_vm0 = vcmask 1043456   ;;  %v511_v2 = vld [vmem:[#allocation7] sm:$0xf]  ;;  %vm517_vm1 = vcmask 64512  }
  0xe1   : > { %v523_v1 = vsel %vm521_vm0, %v512_v0, 0  ;;  %v839_v3 = vld [vmem:[%s417_s0 + $0x8] sm:$0xff]  ;;  %v838_v4 = vld [vmem:[%s417_s0] sm:$0xff]  ;;  %vm560_vm2 = vcmask 261120   ;;  %vm579_vm3 = vcmask 257024  }
  0xe2   : > { %532 = vmatpush.bf16.msra.mxu0 %v523_v1  ;;  %570 = vmatpush.bf16.msra.mxu1 %v839_v3  ;;  %v1034_v5 = vld [vmem:[%s494_s11] ss:$0 sm:$0xff] }
  0xe3   : > { %v1035_v11 = vld [vmem:[%s1862_s9] ss:$0 sm:$0xff] }
  0xe5   : > { %814 = vmatmul.msk.bf16.vlgmr.msra.gmra.mxu0 %vm517_vm1, %v511_v2 }
  0xe6   : > { %571 = vmatpush.bf16.msra.mxu1 %v838_v4 }
 0x162   : > { %v534_v6 = vpop.f32.mrf.mxu0 }
 0x163   : > { %v535_v7 = vadd.f32 %v1034_v5, %v534_v6 }
 0x165   : > { %v538_v8 = vmax.f32 %v535_v7, 0.0 }
 0x167   : > { %v539_v9 = vpack.c.bf16 %v538_v8, %v538_v8 }
 0x169   : > { %823 = vmatmul.msk.bf16.vlgmr.msra.gmra.mxu1 %vm560_vm2, %v539_v9 }
 0x16a   : > { %v536_v10 = vpop.f32.mrf.mxu0 }
 0x1e6   : > { %v573_v12 = vpop.f32.mrf.mxu1 }
 0x1e7   : > { %v574_v13 = vadd.f32 %v1035_v11, %v573_v12 }
 0x1e9   : > { %v577_v14 = vmax.f32 %v574_v13, 0.0 }
 0x1eb   : > { %v578_v15 = vpack.c.bf16 %v577_v14, %v577_v14 }
 0x1ed   : > { %580 = vst.msk [vmem:[#allocation2] sm:$0xf] %vm579_vm3, %v578_v15 }
 0x1ee   : > { %v575_v16 = vpop.f32.mrf.mxu1 }
 0x1ef PF: > { %s2088_s28 = scalar_lea.vmem [#allocation15], %s1869_s25  ;;  %vm602_vm4 = vcmask 261120   ;;  %p2090_p0 = scmp.ne.s32.totalorder %s2038_s15, 0  ;;  %v1036_v20 = vld [vmem:[%s502_s8] ss:$0 sm:$0xff] }
 0x1f0   : > { %v841_v17 = vld [vmem:[%s2088_s28 + $0x8] sm:$0xff]  ;;  %s2089_s10 = smov %s2088_s28  ;;  %s2091_s23 = sld [smem:[#allocation53_spill]] }
 0x1f1   : > { %612 = vmatpush.bf16.msra.mxu0 %v841_v17  ;;  %v840_v18 = vld [vmem:[%s2089_s10] sm:$0xff]  ;;  %s862_s30 = scalar_select %p2090_p0, [#allocation5], [#allocation21] }
 0x1f2   : > { %s2138_s18 = smov (!%p2090_p0, %s1555_s18), 0  ;;  %s634_s3 = sshll.u32 %s489_s14, 4  ;;  %s635_s3 = int_to_ptr.vmem [resolvable:$true] %s634_s3 }
 0x1f3   : > { %s628_s0 = sld [smem:[%s862_s30 + %s2138_s18]]  ;;  %s621_s18 = scalar_lea.sflag [#allocation9], %s487_s19 }
 0x1f4   : > { %v581_v19 = vld [vmem:[#allocation2] sm:$0xf] }
 0x1f5   : > { %613 = vmatpush.bf16.msra.mxu0 %v840_v18 }
 0x1f6   : > { %s1243_s10 = scalar_lea.hbm %s2091_s23, 32 }
 0x1f8   : > { %832 = vmatmul.msk.bf16.vlgmr.msra.gmra.mxu0 %vm602_vm4, %v581_v19 }
 0x1f9   : > { %s834_s9 = sshll.u32 %s628_s0, 3 }
 0x1fa   : > { %s632_s22 = scalar_lea.hbm %s2091_s23, %s834_s9 }
 0x1fb   : > { %s636_s4 = sshll.u32 %s632_s22, 4  ;;  %s637_s4 = int_to_ptr.hbm [resolvable:$true] %s636_s4 }
 0x1fc   : > { %s1237_s16 = sshra.s32 %s637_s4, 4  ;;  %s1238_s16 = int_to_ptr.hbm [resolvable:$true] %s1237_s16 }
 0x1fd   : > { %s1239_s28 = scalar_lea.hbm %s1238_s16, 8  ;;  %p1244_p2 = scmp.lt.s32.totalorder %s1238_s16, %s2091_s23 }
 0x1fe   : > { %p1240_p1 = scmp.ne.s32.totalorder %s1238_s16, %s1239_s28  ;;  %p1245_p10 = scmp.lt.s32.totalorder %s1243_s10, %s1239_s28 }
 0x200   : > { %p1241_p3 = pnand %p1240_p1, %p2090_p0  ;;  %p1246_p8 = por %p1245_p10, %p1244_p2 }
 0x202   : > { %p1242_p11 = pneg %p1241_p3 }
 0x204   : > { %p1247_p7 = pnand %p1246_p8, %p1242_p11 }
 0x275   : > { %v615_v21 = vpop.f32.mrf.mxu0 }
 0x276   : > { %v616_v22 = vadd.f32 %v1036_v20, %v615_v21 }
 0x278   : > { %619 = vst [vmem:[%s489_s14] sm:$0xff] %v616_v22 }
 0x279   : > { %1250 = shalt.err (!%p1247_p7)
}
 0x27a   : > { %864 = dma.vmem_to_hbm [thread:$0]  (%p2090_p0), %s635_s3, 128, %s637_s4, %s621_s18  }
 0x27d   : > { %v617_v23 = vpop.f32.mrf.mxu0 }
 0x27e PF: > { %s2093_s14 = sld [smem:[#allocation33_spill]]  ;;  %p898_p12 = scmp.ge.s32.totalorder %s1403_s17, 2 }
 0x27f   : > { %s2094_s19 = sld [smem:[#allocation42_spill]] }
 0x284   : > { %s648_s2 = sand.u32 1, %s2093_s14  }
 0x285   : > { %p2095_p4 = scmp.ne.s32.totalorder %s2094_s19, 0  ;;  %s649_s9 = scalar_lea.sflag [#allocation9], %s648_s2 }
 0x287   : > { %p892_p6 = pnand %p898_p12, %p2095_p4 }
 0x289   : > { %p893_p5 = pneg %p892_p6 }
 0x28b   : > { %1338 = dma.done.wait (%p893_p5), %s649_s9, 128  }
 0x28c   : > { %1340 = vsyncadd (%p893_p5), %s649_s9, 4294967168  ;;  %s2096_s6 = sld [smem:[#allocation34_spill]]  ;;  %p45_p9 = scmp.ge.s32.totalorder %s1559_s20, 6  }
 0x28d   : > { %s2097_s25 = sld [smem:[#allocation43_spill]]  ;;  %s2105_s0 = smov %s1347_s1 }
 0x28e   : > { %s2098_s15 = sld [smem:[#allocation36_spill]]  ;;  %s2107_s2 = smov %s1359_s26 }
 0x28f   : > { %s2099_s30 = sld [smem:[#allocation44_spill]]  ;;  %s2108_s26 = smov %s1363_s27 }
 0x290   : > { %s2100_s13 = sld [smem:[#allocation37_spill]]  ;;  %s2109_s27 = smov %s1805_s21 }
 0x291   : > { %s2101_s17 = sld [smem:[#allocation45_spill]]  ;;  %s2110_s28 = smov %s1371_s29 }
 0x292   : > { %s2102_s14 = sld [smem:[#allocation38_spill]]  ;;  %s2106_s1 = smov %s2096_s6 }
 0x293   : > { %s2103_s22 = sld [smem:[#allocation39_spill]]  ;;  %s2112_s11 = smov %s1383_s12 }
 0x294   : > { %s2104_s16 = sld [smem:[#allocation41_spill]]  ;;  %s2111_s29 = smov %s2098_s15 }
 0x295   :  { %47 = sbr.rel (!%p45_p9) target bundleno = 29 (0x1d), region = 143 }
 0x296   : > { %s2113_s12 = smov %s2100_s13 }
 0x297   : > { %s2114_s13 = smov %s2101_s17  ;;  %s2116_s17 = smov %s1559_s20 }
 0x299   : > { %s2115_s15 = smov %s2103_s22 }
 0x29a   :  { %655 = vsyncpa [#allocation8], 1 }
 0x29b   :  { %657 = vsyncpa [#allocation8 + $0x1], 1 }
 0x29c   :  { %658 = vsyncpa [#allocation11], 1 }
 0x29d   :  { %660 = vsyncpa [#allocation11 + $0x1], 1 }
 0x29e   :  { %661 = vsyncpa [#allocation14], 1 }
 0x29f   :  { %663 = vsyncpa [#allocation14 + $0x1], 1 }
 0x2a0   :  { %664 = vsyncpa [#allocation9], 1 }
 0x2a1   :  { %666 = vsyncpa [#allocation9 + $0x1], 1 }

</bundles_post_ra>
